<compile_context>
chip_gen: v7x
topology: tpu7x:2x2x1
jax: 0.10.0
libtpu: 0.0.40
codegen_flags: <defaults>
</compile_context>

<pallas_src>
import functools
import math

import jax
import jax.numpy as jnp
from jax.experimental import pallas as pl
from jax.experimental.pallas import tpu as pltpu


def _round_up(a, b):
    return ((a + b - 1) // b) * b


def _choose_tile(M, tile_m):
    """Row tile: full M for small inputs, else a multiple of 8 close to tile_m
    that divides M (avoids a padding pass); fall back to padding otherwise."""
    if M <= tile_m:
        return M                      # block dim == full array dim is legal
    t = max(8, (tile_m // 8) * 8)
    cand = t
    while cand >= 128:
        if M % cand == 0:
            return cand
        cand -= 8
    return t                          # rare: last block handled via zero-pad


# ----------------------------------------------------------------------------
# Kernels
# ----------------------------------------------------------------------------
def _decoder_fused_kernel(x_ref, z_ref, wx_ref, wz_ref, b_ref, o_ref):
    # y = x @ Wx + z @ Wz + b_eff   (two Linears pre-fused into W_eff/b_eff)
    x = x_ref[...].astype(jnp.bfloat16)   # cast in-kernel: HBM inputs stay f32
    z = z_ref[...].astype(jnp.bfloat16)   # and are read exactly once
    acc = jnp.dot(x, wx_ref[...], preferred_element_type=jnp.float32)
    acc += jnp.dot(z, wz_ref[...], preferred_element_type=jnp.float32)
    o_ref[...] = (acc + b_ref[...]).astype(o_ref.dtype)


def _decoder_unfused_kernel(x_ref, z_ref, w1x_ref, w1z_ref, b1_ref,
                            w2_ref, b2_ref, o_ref):
    # h = cat(x, z) @ W1 + b1 ; y = h @ W2 + b2   (no weight fusion)
    x = x_ref[...].astype(jnp.bfloat16)
    z = z_ref[...].astype(jnp.bfloat16)
    h = jnp.dot(x, w1x_ref[...], preferred_element_type=jnp.float32)
    h += jnp.dot(z, w1z_ref[...], preferred_element_type=jnp.float32)
    h = (h + b1_ref[...]).astype(jnp.bfloat16)
    y = jnp.dot(h, w2_ref[...], preferred_element_type=jnp.float32) + b2_ref[...]
    o_ref[...] = y.astype(o_ref.dtype)


# ----------------------------------------------------------------------------
# One-time weight preparation (hoisted out of the per-call forward)
# ----------------------------------------------------------------------------
def prepare_decoder_params(w1, b1, w2, b2, force_fused=None):
    """w1: (model_dim+z_dim, z_dim), b1: (z_dim,)
       w2: (z_dim, output_dim),      b2: (output_dim,)
       (weights stored (in, out) so the math is x @ W + b).
       Returns (fused: bool, params: tuple)."""
    in_dim, z_dim = w1.shape
    out_dim = w2.shape[1]
    model_dim = in_dim - z_dim
    # Fuse only when the dense effective weight does not inflate FLOPs /
    # weight DMA bytes (guard against large output_dim regressions).
    fused = (in_dim * out_dim) <= (z_dim * (in_dim + out_dim))
    if force_fused is not None:
        fused = force_fused
    f32 = jnp.float32
    if fused:
        # Fusion done in f32, single rounding to bf16 afterwards.
        w_eff = jnp.dot(w1.astype(f32), w2.astype(f32))             # (in, out)
        b_eff = jnp.dot(b1.astype(f32), w2.astype(f32)) + b2.astype(f32)
        params = (
            w_eff[:model_dim].astype(jnp.bfloat16),                 # Wx
            w_eff[model_dim:].astype(jnp.bfloat16),                 # Wz
            b_eff.reshape(1, out_dim).astype(f32),
        )
    else:
        params = (
            w1[:model_dim].astype(jnp.bfloat16),                    # W1x
            w1[model_dim:].astype(jnp.bfloat16),                    # W1z
            b1.reshape(1, z_dim).astype(f32),
            w2.astype(jnp.bfloat16),                                # W2
            b2.reshape(1, out_dim).astype(f32),
        )
    return fused, params


# ----------------------------------------------------------------------------
# Forward
# ----------------------------------------------------------------------------
@functools.partial(jax.jit, static_argnames=("fused", "tile_m"))
def decoder_forward(x, z, params, *, fused=True, tile_m=1024):
    """x: [..., model_dim], z: [..., z_dim] -> y: [..., output_dim]."""
    lead = x.shape[:-1]
    model_dim = x.shape[-1]
    z_dim = z.shape[-1]
    out_dim = params[-1].shape[-1]
    M = math.prod(lead)

    # Layout-preserving reshape to 2-D (no HBM copy for contiguous inputs).
    x2 = x.reshape(M, model_dim)
    z2 = z.reshape(M, z_dim)

    tile = _choose_tile(M, tile_m)
    M_pad = _round_up(M, tile)
    if M_pad != M:   # rare fallback; padded rows produce b_eff and are sliced off
        x2 = jnp.pad(x2, ((0, M_pad - M), (0, 0)))
        z2 = jnp.pad(z2, ((0, M_pad - M), (0, 0)))
    grid = (M_pad // tile,)

    row_spec = lambda d: pl.BlockSpec((tile, d), lambda i: (i, 0))
    # Grid-invariant operands (weights/biases): constant index map -> no re-DMA.
    const_spec = lambda a: pl.BlockSpec(a.shape, lambda i: (0, 0))

    kernel = _decoder_fused_kernel if fused else _decoder_unfused_kernel
    in_specs = [row_spec(model_dim), row_spec(z_dim)] + [const_spec(p) for p in params]

    y2 = pl.pallas_call(
        kernel,
        # Unpadded output (last dim == out_dim): masked stores, but 16x less
        # HBM writeback than a 128-lane-padded f32 slab and no post-slice pass.
        out_shape=jax.ShapeDtypeStruct((M_pad, out_dim), x.dtype),
        grid_spec=pltpu.PrefetchScalarGridSpec(
            num_scalar_prefetch=0,
            grid=grid,
            in_specs=in_specs,
            out_specs=pl.BlockSpec((tile, out_dim), lambda i: (i, 0)),
        ),
        compiler_params=pltpu.CompilerParams(
            # Row axis is independent; v7x megacore can shard it when grid >= 2.
            # (Per-step VMEM working set is < 1 MiB even at tile_m=2048, so no
            #  vmem_limit_bytes override is needed on any generation.)
            dimension_semantics=("parallel",),
        ),
    )(x2, z2, *params)

    if M_pad != M:
        y2 = y2[:M]
    return y2.reshape(*lead, out_dim)


def _init_linear(key, fan_in, fan_out, dtype=jnp.float32):
    # Mimics torch.nn.Linear default init (uniform +-1/sqrt(fan_in)), stored
    # as (in, out) so the math is x @ W + b.
    kw, kb = jax.random.split(key)
    bound = 1.0 / jnp.sqrt(fan_in)
    w = jax.random.uniform(kw, (fan_in, fan_out), dtype, -bound, bound)
    b = jax.random.uniform(kb, (fan_out,), dtype, -bound, bound)
    return w, b


if __name__ == "__main__":
    # Small shapes consistent with the module's forward:
    #   x [B,T,N,model_dim], z [B,T,N,z_dim] -> y [B,T,N,output_dim]
    B, T, N = 2, 8, 4
    model_dim, z_dim, output_dim = 32, 16, 8

    key = jax.random.PRNGKey(0)
    kx, kz, k1, k2 = jax.random.split(key, 4)

    x = jax.random.normal(kx, (B, T, N, model_dim), jnp.float32)
    z = jax.random.normal(kz, (B, T, N, z_dim), jnp.float32)

    w1, b1 = _init_linear(k1, model_dim + z_dim, z_dim)   # Linear(md+zd -> zd)
    w2, b2 = _init_linear(k2, z_dim, output_dim)          # Linear(zd -> out)

    # Reference in plain f32 JAX (same math as the PyTorch module).
    hidden = jnp.concatenate([x, z], axis=-1)
    y_ref = (hidden @ w1 + b1) @ w2 + b2

    # Weight prep runs once per weight set, outside the forward jit.
    fused, params = prepare_decoder_params(w1, b1, w2, b2)
    y = jax.block_until_ready(decoder_forward(x, z, params, fused=fused))
    assert y.shape == (B, T, N, output_dim)
    # bf16 operands (f32 accumulation) -> looser tolerance than pure f32.
    assert jnp.allclose(y, y_ref, atol=2e-2, rtol=2e-2), float(
        jnp.max(jnp.abs(y - y_ref)))

    # Also exercise the unfused fallback (used when output_dim is large).
    fused_u, params_u = prepare_decoder_params(w1, b1, w2, b2, force_fused=False)
    y_u = jax.block_until_ready(decoder_forward(x, z, params_u, fused=fused_u))
    assert jnp.allclose(y_u, y_ref, atol=2e-2, rtol=2e-2), float(
        jnp.max(jnp.abs(y_u - y_ref)))

    print("KERNEL_OK")
</pallas_src>

<mosaic_0001>
module attributes {stable_mosaic.version = 11 : i64} {
  func.func @_decoder_fused_kernel(%arg0: i32, %arg1: memref<64x32xf32, #tpu.memory_space<vmem>>, %arg2: memref<64x16xf32, #tpu.memory_space<vmem>>, %arg3: memref<32x8xbf16, #tpu.memory_space<vmem>>, %arg4: memref<16x8xbf16, #tpu.memory_space<vmem>>, %arg5: memref<1x8xf32, #tpu.memory_space<vmem>>, %arg6: memref<64x8xf32, #tpu.memory_space<vmem>>) attributes {dimension_semantics = [#tpu.dimension_semantics<parallel>], iteration_bounds = array<i64: 1>, scalar_prefetch = 0 : i64, scratch_operands = 0 : i64, tpu.core_type = #tpu.core_type<tc>, window_params = [{transform_indices = @transform_0, window_bounds = array<i64: 64, 32>}, {transform_indices = @transform_1, window_bounds = array<i64: 64, 16>}, {pipeline_mode = #tpu.pipeline_mode<synchronous>, transform_indices = @transform_2, window_bounds = array<i64: 32, 8>}, {pipeline_mode = #tpu.pipeline_mode<synchronous>, transform_indices = @transform_3, window_bounds = array<i64: 16, 8>}, {pipeline_mode = #tpu.pipeline_mode<synchronous>, transform_indices = @transform_4, window_bounds = array<i64: 1, 8>}, {transform_indices = @transform_5, window_bounds = array<i64: 64, 8>}]} {
    %c0 = arith.constant 0 : index
    %c0_0 = arith.constant 0 : index
    %0 = vector.load %arg1[%c0, %c0_0] : memref<64x32xf32, #tpu.memory_space<vmem>>, vector<64x32xf32>
    %1 = arith.truncf %0 : vector<64x32xf32> to vector<64x32xbf16>
    %c0_1 = arith.constant 0 : index
    %c0_2 = arith.constant 0 : index
    %2 = vector.load %arg2[%c0_1, %c0_2] : memref<64x16xf32, #tpu.memory_space<vmem>>, vector<64x16xf32>
    %3 = arith.truncf %2 : vector<64x16xf32> to vector<64x16xbf16>
    %c0_3 = arith.constant 0 : index
    %c0_4 = arith.constant 0 : index
    %4 = vector.load %arg3[%c0_3, %c0_4] : memref<32x8xbf16, #tpu.memory_space<vmem>>, vector<32x8xbf16>
    %cst = arith.constant dense<0.000000e+00> : vector<64x8xf32>
    %5 = tpu.matmul %1, %4, %cst {dimension_numbers = #tpu.dot_dimension_numbers<[1], [0], [0], [1], [0, 0, 1, 1], [], []>} : vector<64x32xbf16>, vector<32x8xbf16>, vector<64x8xf32> -> vector<64x8xf32>
    %c0_5 = arith.constant 0 : index
    %c0_6 = arith.constant 0 : index
    %6 = vector.load %arg4[%c0_5, %c0_6] : memref<16x8xbf16, #tpu.memory_space<vmem>>, vector<16x8xbf16>
    %cst_7 = arith.constant dense<0.000000e+00> : vector<64x8xf32>
    %7 = tpu.matmul %3, %6, %cst_7 {dimension_numbers = #tpu.dot_dimension_numbers<[1], [0], [0], [1], [0, 0, 1, 1], [], []>} : vector<64x16xbf16>, vector<16x8xbf16>, vector<64x8xf32> -> vector<64x8xf32>
    %8 = arith.addf %5, %7 : vector<64x8xf32>
    %c0_8 = arith.constant 0 : index
    %c0_9 = arith.constant 0 : index
    %9 = vector.load %arg5[%c0_8, %c0_9] : memref<1x8xf32, #tpu.memory_space<vmem>>, vector<1x8xf32>
    %10 = vector.broadcast %9 : vector<1x8xf32> to vector<64x8xf32>
    %11 = arith.addf %8, %10 : vector<64x8xf32>
    %c0_10 = arith.constant 0 : index
    %c0_11 = arith.constant 0 : index
    %12 = vector.load %arg6[%c0_10, %c0_11] : memref<64x8xf32, #tpu.memory_space<vmem>>, vector<64x8xf32>
    tpu.vector_store %arg6[%c0_10, %c0_11], %11 {strides = array<i32>} : memref<64x8xf32, #tpu.memory_space<vmem>>, vector<64x8xf32>,
    return
  }
  func.func @transform_0(%arg0: i32) -> (i32, i32) {
    %c0_i32 = arith.constant 0 : i32
    %c0_i32_0 = arith.constant 0 : i32
    return %arg0, %c0_i32 : i32, i32
  }
  func.func @transform_1(%arg0: i32) -> (i32, i32) {
    %c0_i32 = arith.constant 0 : i32
    %c0_i32_0 = arith.constant 0 : i32
    return %arg0, %c0_i32 : i32, i32
  }
  func.func @transform_2(%arg0: i32) -> (i32, i32) {
    %c0_i32 = arith.constant 0 : i32
    %c0_i32_0 = arith.constant 0 : i32
    %c0_i32_1 = arith.constant 0 : i32
    return %c0_i32, %c0_i32_0 : i32, i32
  }
  func.func @transform_3(%arg0: i32) -> (i32, i32) {
    %c0_i32 = arith.constant 0 : i32
    %c0_i32_0 = arith.constant 0 : i32
    %c0_i32_1 = arith.constant 0 : i32
    return %c0_i32, %c0_i32_0 : i32, i32
  }
  func.func @transform_4(%arg0: i32) -> (i32, i32) {
    %c0_i32 = arith.constant 0 : i32
    %c0_i32_0 = arith.constant 0 : i32
    %c0_i32_1 = arith.constant 0 : i32
    return %c0_i32, %c0_i32_0 : i32, i32
  }
  func.func @transform_5(%arg0: i32) -> (i32, i32) {
    %c0_i32 = arith.constant 0 : i32
    %c0_i32_0 = arith.constant 0 : i32
    return %arg0, %c0_i32 : i32, i32
  }
}

</mosaic_0001>

<bundles_post_ra>
// kernel: decoder_forward.1
= control target key start
LH: loop header
LB: loop body
LE: loop exit
PB: predicated region body
PF: predicated region fallthrough
CT: control target
= control target key end

     0   :  { %10 = vsyncpa [#allocation3], 0  ;;  %s537_s0 = inlined_call_operand.hbm [shape: f32[64,32], index: 0, kind: input, shape index: {}]   ;;  %s538_s1 = inlined_call_operand.hbm [shape: f32[64,16], index: 1, kind: input, shape index: {}]   ;;  %s539_s2 = inlined_call_operand.vmem [shape: bf16[32,8], index: 2, kind: input, shape index: {}]   ;;  %s540_s3 = inlined_call_operand.vmem [shape: bf16[16,8], index: 3, kind: input, shape index: {}]   ;;  %s541_s4 = inlined_call_operand.vmem [shape: f32[1,8], index: 4, kind: input, shape index: {}]   ;;  %s542_s5 = inlined_call_operand.hbm [shape: f32[64,8], index: 5, kind: output, shape index: {}]  }
   0x1   :  { %11 = vsyncpa [#allocation6], 0 }
   0x2   :  { %12 = vsyncpa [#allocation4], 0  ;;  %s429_s18 = smov [#allocation2]   ;;  %s357_s22 = scalar_lea.hbm %s537_s0, 1024 }
   0x3   :  { %s18_s19 = sshll.u32 %s429_s18, 4  ;;  %p358_p0 = scmp.ne.s32.totalorder %s537_s0, %s357_s22  ;;  %s19_s19 = int_to_ptr.vmem [resolvable:$true] %s18_s19 }
   0x4   :  { %p361_p1 = scmp.lt.u32.totalorder %s357_s22, %s537_s0 }
   0x6   :  { %p363_p2 = pnand %p361_p1, %p358_p0 }
   0x8   :  { %366 = shalt.err (!%p363_p2)
}
   0x9   :  { %s367_s27 = scalar_lea.vmem %s19_s19, 1024  ;;  %p372_p4 = scmp.lt.s32.totalorder %s19_s19, %s19_s19 }
   0xa   :  { %p368_p3 = scmp.ne.s32.totalorder %s19_s19, %s367_s27  ;;  %p373_p5 = scmp.lt.s32.totalorder %s367_s27, %s367_s27 }
   0xc   :  { %p374_p6 = por %p373_p5, %p372_p4 }
   0xe   :  { %p375_p7 = pnand %p374_p6, %p368_p3 }
  0x10   :  { %378 = shalt.err (!%p375_p7)
}
  0x11   :  { %s430_s28 = smov 128   ;;  %s431_s29 = smov 8  }
  0x12   :  { %24 = dma.hbm_to_vmem [thread:$0]  %s537_s0, 1024, %s19_s19, [#allocation3], %s430_s28, %s430_s28, %s431_s29  }
  0x13   :  { %s432_s7 = smov [#allocation5]   ;;  %s379_s11 = scalar_lea.hbm %s538_s1, 1024 }
  0x14   :  { %s30_s8 = sshll.u32 %s432_s7, 4  ;;  %p380_p8 = scmp.ne.s32.totalorder %s538_s1, %s379_s11  ;;  %s31_s8 = int_to_ptr.vmem [resolvable:$true] %s30_s8 }
  0x15   :  { %p383_p9 = scmp.lt.u32.totalorder %s379_s11, %s538_s1 }
  0x17   :  { %p385_p10 = pnand %p383_p9, %p380_p8 }
  0x19   :  { %388 = shalt.err (!%p385_p10)
}
  0x1a   :  { %s389_s16 = scalar_lea.vmem %s31_s8, 1024  ;;  %p394_p12 = scmp.lt.s32.totalorder %s31_s8, %s31_s8 }
  0x1b   :  { %p390_p11 = scmp.ne.s32.totalorder %s31_s8, %s389_s16  ;;  %p395_p13 = scmp.lt.s32.totalorder %s389_s16, %s389_s16 }
  0x1d   :  { %p396_p0 = por %p395_p13, %p394_p12 }
  0x1f   :  { %p397_p1 = pnand %p396_p0, %p390_p11 }
  0x21   :  { %400 = shalt.err (!%p397_p1)
}
  0x22   :  { %36 = dma.hbm_to_vmem [thread:$0]  %s538_s1, 1024, %s31_s8, [#allocation6], %s430_s28, %s430_s28, %s431_s29  }
  0x23   :  { %423 = dma.done.wait [#allocation3], 1024  }
  0x24   :  { %424 = vsyncadd [#allocation3], 4294966272 }
  0x25   :  { %425 = dma.done.wait [#allocation6], 1024  }
  0x26   :  { %426 = vsyncadd [#allocation6], 4294966272  ;;  %v354_v0 = vld [vmem:[%s539_s2] sm:$0xff]   ;;  %v63_v3 = vld [vmem:[#allocation5 + $0x8] sm:$0xff]  ;;  %vm86_vm0 = vcmask 130048   ;;  %vm176_vm1 = vcmask 261120  }
  0x27   :  { %v355_v1 = vld [vmem:[%s540_s3] sm:$0xff]   ;;  %329 = vmatprep.subr.bf16.mxu0 %v354_v0  ;;  %v356_v5 = vld [vmem:[%s539_s2 + $0x8] sm:$0xff]   ;;  %v64_v6 = vld [vmem:[#allocation5 + $0x10] sm:$0xff]  ;;  %vm269_vm2 = vcmask 64512  }
  0x28   :  { %v62_v2 = vld [vmem:[#allocation5] sm:$0xff]  ;;  %319 = vmatprep.subr.bf16.mxu1 %v355_v1  ;;  %330 = vmatpush3.bf16.msra.mxu0 %v354_v0  ;;  %v65_v7 = vld [vmem:[#allocation5 + $0x18] sm:$0xff]  ;;  %v51_v9 = vld [vmem:[#allocation2 + $0x8] sm:$0xff] }
  0x29   :  { %v70_v4 = vpack.c.bf16 %v63_v3, %v62_v2  ;;  %320 = vmatpush3.bf16.msra.mxu1 %v355_v1  ;;  %v50_v8 = vld [vmem:[#allocation2] sm:$0xff]  ;;  %331 = vmatprep.subr.bf16.mxu0 %v356_v5  ;;  %v71_v10 = vpack.c.bf16 %v65_v7, %v64_v6  ;;  %v52_v12 = vld [vmem:[#allocation2 + $0x10] sm:$0xff]  ;;  %v53_v13 = vld [vmem:[#allocation2 + $0x18] sm:$0xff] }
  0x2a   :  { %v58_v11 = vpack.c.bf16 %v51_v9, %v50_v8  ;;  %v66_v14 = vld [vmem:[#allocation5 + $0x20] sm:$0xff]  ;;  %v59_v15 = vpack.c.bf16 %v53_v13, %v52_v12  ;;  %v67_v16 = vld [vmem:[#allocation5 + $0x28] sm:$0xff]  ;;  %v68_v20 = vld [vmem:[#allocation5 + $0x30] sm:$0xff] }
  0x2b   :  { %321 = vmatprep.mubr.msk.bf16.mxu1 %vm86_vm0, %v70_v4  ;;  %v72_v17 = vpack.c.bf16 %v67_v16, %v66_v14  ;;  %v54_v18 = vld [vmem:[#allocation2 + $0x20] sm:$0xff]  ;;  %v55_v19 = vld [vmem:[#allocation2 + $0x28] sm:$0xff]  ;;  %v69_v21 = vld [vmem:[#allocation5 + $0x38] sm:$0xff] }
  0x2c   :  { %322 = vmatmul.mubr.msk.bf16.vlgmr.msra.gmra.mrb[0].mxu1 %vm86_vm0, %v71_v10  ;;  %332 = vmatpush3.bf16.msra.mxu0 %v356_v5  ;;  %v60_v22 = vpack.c.bf16 %v55_v19, %v54_v18  ;;  %v73_v23 = vpack.c.bf16 %v69_v21, %v68_v20  ;;  %v56_v24 = vld [vmem:[#allocation2 + $0x30] sm:$0xff]  ;;  %v57_v25 = vld [vmem:[#allocation2 + $0x38] sm:$0xff]  ;;  %v307_v32 = vld [vmem:[%s541_s4] ss:$0 sm:$0xff]  ;;  %s433_s4 = smov [#allocation7]  }
  0x2d   :  { %333 = vmatprep.mubr.msk.bf16.mxu0 %vm176_vm1, %v58_v11  ;;  %325 = vmatprep.mubr.msk.bf16.mxu1 %vm86_vm0, %v72_v17  ;;  %v61_v26 = vpack.c.bf16 %v57_v25, %v56_v24  ;;  %s283_s23 = sshll.u32 %s433_s4, 4  ;;  %s284_s23 = int_to_ptr.vmem [resolvable:$true] %s283_s23 }
  0x2e   :  { %s401_s24 = scalar_lea.vmem %s284_s23, 1024  ;;  %p406_p3 = scmp.lt.s32.totalorder %s284_s23, %s284_s23 }
  0x2f   :  { %334 = vmatmul.mubr.msk.bf16.vlgmr.msra.gmra.mrb[0].mxu0 %vm176_vm1, %v59_v15  ;;  %p402_p2 = scmp.ne.s32.totalorder %s284_s23, %s401_s24  ;;  %p407_p4 = scmp.lt.s32.totalorder %s401_s24, %s401_s24 }
  0x30   :  { %337 = vmatprep.mubr.msk.bf16.mxu0 %vm176_vm1, %v60_v22 }
  0x31   :  { %p408_p5 = por %p407_p4, %p406_p3 }
  0x33   :  { %p409_p6 = pnand %p408_p5, %p402_p2 }
  0x34   :  { %326 = vmatmul.mubr.msk.bf16.gmra.mrb[4].mxu1 %vm86_vm0, %v73_v23 }
  0x37   :  { %338 = vmatmul.mubr.msk.bf16.gmra.mrb[4].mxu0 %vm176_vm1, %v61_v26 }
  0xff   :  { %v323_v27 = vpop.f32.mrb[0].mxu1 }
 0x100   :  { %v133_v28 = vpop.f32.mrb[1].mxu1 }
 0x101   :  { %v324_v29 = vpop.f32.mrb[2].mxu1 }
 0x102   :  { %v136_v30 = vpop.f32.mrb[3].mxu1  ;;  %v335_v31 = vpop.f32.mrb[0].mxu0 }
 0x103   :  { %v232_v33 = vadd.f32 %v335_v31, %v323_v27  ;;  %v223_v34 = vpop.f32.mrb[1].mxu0 }
 0x104   :  { %v224_v35 = vadd.f32 %v223_v34, %v133_v28  ;;  %v336_v36 = vpop.f32.mrb[2].mxu0 }
 0x105   :  { %v263_v37 = vadd.f32 %v307_v32, %v232_v33  ;;  %v235_v38 = vadd.f32 %v336_v36, %v324_v29  ;;  %v226_v39 = vpop.f32.mrb[3].mxu0 }
 0x106   :  { %v261_v40 = vadd.f32 %v307_v32, %v224_v35  ;;  %v227_v41 = vadd.f32 %v226_v39, %v136_v30 }
 0x107   :  { %272 = vst.msk [vmem:[#allocation7 + $0x10] sm:$0xff] %vm269_vm2, %v263_v37  ;;  %v264_v42 = vadd.f32 %v307_v32, %v235_v38  ;;  %v327_v43 = vpop.f32.mrb[4].mxu1 }
 0x108   :  { %270 = vst.msk [vmem:[#allocation7] sm:$0xff] %vm269_vm2, %v261_v40  ;;  %v262_v44 = vadd.f32 %v307_v32, %v227_v41  ;;  %v149_v45 = vpop.f32.mrb[5].mxu1 }
 0x109   :  { %273 = vst.msk [vmem:[#allocation7 + $0x18] sm:$0xff] %vm269_vm2, %v264_v42  ;;  %v328_v46 = vpop.f32.mrb[6].mxu1 }
 0x10a   :  { %271 = vst.msk [vmem:[#allocation7 + $0x8] sm:$0xff] %vm269_vm2, %v262_v44  ;;  %v152_v47 = vpop.f32.mrb[7].mxu1  ;;  %v339_v48 = vpop.f32.mrb[4].mxu0 }
 0x10b   :  { %v248_v49 = vadd.f32 %v339_v48, %v327_v43  ;;  %v239_v50 = vpop.f32.mrb[5].mxu0 }
 0x10c   :  { %v240_v51 = vadd.f32 %v239_v50, %v149_v45  ;;  %v340_v52 = vpop.f32.mrb[6].mxu0 }
 0x10d   :  { %v267_v53 = vadd.f32 %v307_v32, %v248_v49  ;;  %v251_v54 = vadd.f32 %v340_v52, %v328_v46  ;;  %v242_v55 = vpop.f32.mrb[7].mxu0 }
 0x10e   :  { %v265_v56 = vadd.f32 %v307_v32, %v240_v51  ;;  %v243_v57 = vadd.f32 %v242_v55, %v152_v47 }
 0x10f   :  { %276 = vst.msk [vmem:[#allocation7 + $0x30] sm:$0xff] %vm269_vm2, %v267_v53  ;;  %v268_v58 = vadd.f32 %v307_v32, %v251_v54 }
 0x110   :  { %274 = vst.msk [vmem:[#allocation7 + $0x20] sm:$0xff] %vm269_vm2, %v265_v56  ;;  %v266_v59 = vadd.f32 %v307_v32, %v243_v57 }
 0x111   :  { %277 = vst.msk [vmem:[#allocation7 + $0x38] sm:$0xff] %vm269_vm2, %v268_v58 }
 0x112   :  { %275 = vst.msk [vmem:[#allocation7 + $0x28] sm:$0xff] %vm269_vm2, %v266_v59 }
 0x113   :  { %412 = shalt.err (!%p409_p6)
}
 0x114   :  { %s413_s27 = scalar_lea.hbm %s542_s5, 1024 }
 0x115   :  { %p414_p7 = scmp.ne.s32.totalorder %s542_s5, %s413_s27  ;;  %p417_p8 = scmp.lt.u32.totalorder %s413_s27, %s542_s5 }
 0x117   :  { %p419_p9 = pnand %p417_p8, %p414_p7 }
 0x119   :  { %422 = shalt.err (!%p419_p9)
}
 0x11a   :  { %289 = dma.vmem_to_hbm [thread:$0]  %s284_s23, 1024, %s542_s5, [#allocation4], %s430_s28, %s430_s28, %s431_s29  }
 0x11b   :  { %427 = dma.done.wait [#allocation4], 1024  }
 0x11c   :  { %428 = vsyncadd [#allocation4], 4294966272 }
 0x11d   :  { %293 = vsyncpa [#allocation3], 1 }
 0x11e   :  { %294 = vsyncpa [#allocation6], 1 }
 0x11f   :  { %295 = vsyncpa [#allocation4], 1 }

</bundles_post_ra>
